<compile_context>
chip_gen: v7x
topology: tpu7x:2x2x1
jax: 0.10.0
libtpu: 0.0.40
codegen_flags: <defaults>
</compile_context>

<pallas_src>
import jax
import jax.numpy as jnp
from jax.experimental import pallas as pl
from jax.experimental.pallas import tpu as pltpu

TEMPERATURE = 0.1
EPS = 1e-12                 # matches torch.nn.functional.normalize default eps
_INV_T = 1.0 / TEMPERATURE
# exp(s) is computed WITHOUT a shift; safe because |s| <= 1/T and exp(1/T) fits f32.
assert _INV_T < 80.0, "shift-free exp path requires a moderate 1/temperature"


def _round_up(x, m):
    return ((x + m - 1) // m) * m


def _choose_tiles(b, d, row_tile, col_tile, itemsize):
    """Pick (tm, tn): tn lane-aligned, tm a multiple of tn, VMEM-capped for v7x."""
    if b < 128:
        t = _round_up(b, 8)               # single tile; keep sublane dim 8-divisible
        return t, t
    assert col_tile % 128 == 0
    tn = min(col_tile, _round_up(b, 128))
    tm = min(_round_up(b, tn), max(tn, (row_tile // tn) * tn))
    # double-buffered operand tiles + f32 (tm,tn) temporaries must fit ~40 MiB
    # (v7x has 64 MiB VMEM; v5e/v6e have 128 MiB).
    budget = 40 * 1024 * 1024
    def est(tm_):
        return 2 * (tm_ + tn) * d * itemsize + 3 * tm_ * tn * 4
    while tm > tn and est(tm) > budget:
        tm -= tn
    return tm, tn


def _make_kernel(batch, tm, tn, num_j, padded):
    """Tiled InfoNCE kernel body.  All sizes are static Python ints."""
    r = tm // tn              # column tiles per row tile (diagonal spans j in [i*r,(i+1)*r))
    i0 = batch // tm          # first row tile touching padded rows
    j0 = batch // tn          # first column tile touching padded columns

    def kernel(img_ref, cap_ref, part_ref, colsum_ref, l_row_ref, acc_ref):
        i = pl.program_id(0)          # row (image) tile, "parallel"
        j = pl.program_id(1)          # column (caption) tile, innermost reduction

        # ---- per-row-tile init ---------------------------------------------
        @pl.when(j == 0)
        def _():
            l_row_ref[...] = jnp.zeros_like(l_row_ref)
            acc_ref[...] = jnp.zeros_like(acc_ref)
            part_ref[...] = jnp.zeros_like(part_ref)   # defensive init of resident block

        # ---- logits tile: bf16 MXU matmul, f32 accumulate (1/T pre-folded) --
        s = jax.lax.dot_general(
            img_ref[...], cap_ref[...],
            dimension_numbers=(((1,), (1,)), ((), ())),
            preferred_element_type=jnp.float32)        # (tm, tn)
        e = jnp.exp(s)     # one exp per logit, shared by row and column reductions

        def accumulate(ev):
            l_row_ref[...] += jnp.sum(ev, axis=1, keepdims=True)
            csum = jnp.sum(ev, axis=0, keepdims=True)                 # (1, tn)
            colsum_ref[...] = jnp.broadcast_to(csum[:, None, :], (1, 8, tn))

        if padded:
            # mask only on tiles that actually touch padded rows/columns
            edge = (i >= i0) | (j >= j0)

            @pl.when(jnp.logical_not(edge))
            def _():
                accumulate(e)

            @pl.when(edge)
            def _():
                rv = (i * tm + jax.lax.broadcasted_iota(jnp.int32, (tm, 1), 0)) < batch
                cv = (j * tn + jax.lax.broadcasted_iota(jnp.int32, (1, tn), 1)) < batch
                accumulate(jnp.where(rv & cv, e, 0.0))
        else:
            accumulate(e)

        # ---- diagonal (positives): per-pair dots on the aligned image rows ---
        # Padded rows/cols are zero vectors -> their diag contribution is 0, no mask.
        @pl.when((j >= i * r) & (j < (i + 1) * r))
        def _():
            if r == 1:
                img_slice = img_ref[...]
            else:
                off = pl.multiple_of((j - i * r) * tn, tn)
                img_slice = img_ref[pl.ds(off, tn), :]
            d_vec = jnp.sum(img_slice.astype(jnp.float32) *
                            cap_ref[...].astype(jnp.float32),
                            axis=-1, keepdims=True)                   # (tn, 1) == s_aa
            acc_ref[...] = acc_ref[...] - 2.0 * jnp.sum(d_vec)

        # ---- row-tile epilogue: finalize row-side lse, emit partial loss ------
        @pl.when(j == num_j - 1)
        def _():
            row_lse = jnp.log(l_row_ref[...])                         # (tm, 1)
            if padded:
                rid = i * tm + jax.lax.broadcasted_iota(jnp.int32, (tm, 1), 0)
                row_lse = jnp.where(rid < batch, row_lse, 0.0)
            total = acc_ref[...] + jnp.sum(row_lse)                   # (1, 1)
            part_ref[...] = jnp.broadcast_to(jnp.reshape(total, (1, 1, 1)), (1, 8, 128))

    return kernel


def infonce_contrastive_loss(images, captions, *, row_tile=512, col_tile=256,
                             matmul_dtype=jnp.bfloat16):
    """images, captions: (B, D) float -> scalar f32 symmetric InfoNCE loss."""
    b, d = images.shape
    assert captions.shape == (b, d)

    # One fused O(B*D) normalization pass (torch.nn.functional.normalize semantics);
    # 1/T folded into the image side; operands streamed to the kernel in bf16.
    img32 = images.astype(jnp.float32)
    cap32 = captions.astype(jnp.float32)
    img_n = img32 / jnp.maximum(jnp.linalg.norm(img32, axis=-1, keepdims=True), EPS)
    cap_n = cap32 / jnp.maximum(jnp.linalg.norm(cap32, axis=-1, keepdims=True), EPS)
    img_n = (img_n * _INV_T).astype(matmul_dtype)
    cap_n = cap_n.astype(matmul_dtype)

    itemsize = jnp.dtype(matmul_dtype).itemsize
    tm, tn = _choose_tiles(b, d, row_tile, col_tile, itemsize)
    b_pad = _round_up(b, tm)
    num_i, num_j = b_pad // tm, b_pad // tn
    padded = (b_pad != b)
    if padded:
        pad = ((0, b_pad - b), (0, 0))
        img_n = jnp.pad(img_n, pad)
        cap_n = jnp.pad(cap_n, pad)

    kernel = _make_kernel(b, tm, tn, num_j, padded)

    part, colsum = pl.pallas_call(
        kernel,
        out_shape=(
            jax.ShapeDtypeStruct((num_i, 8, 128), jnp.float32),     # per-row-tile loss
            jax.ShapeDtypeStruct((num_i, 8, b_pad), jnp.float32),   # per-row-tile col sums
        ),
        grid_spec=pltpu.PrefetchScalarGridSpec(
            num_scalar_prefetch=0,
            grid=(num_i, num_j),
            in_specs=[
                pl.BlockSpec((tm, d), lambda i, j: (i, 0)),   # image tile: resident over j
                pl.BlockSpec((tn, d), lambda i, j: (j, 0)),   # caption tile: streamed over j
            ],
            out_specs=[
                pl.BlockSpec((1, 8, 128), lambda i, j: (i, 0, 0)),
                pl.BlockSpec((1, 8, tn), lambda i, j: (i, 0, j)),
            ],
            scratch_shapes=[
                pltpu.VMEM((tm, 1), jnp.float32),   # row sum-of-exp state
                pltpu.VMEM((1, 1), jnp.float32),    # per-row-tile scalar accumulator
            ],
        ),
        compiler_params=pltpu.CompilerParams(
            dimension_semantics=("parallel", "arbitrary"),
            vmem_limit_bytes=48 * 1024 * 1024,
        ),
    )(img_n, cap_n)

    # Tiny O(B) finalize in plain JAX (also what makes grid axis 0 parallelizable).
    row_side = jnp.sum(part[:, 0, 0])                           # sum_rows lse - 2*sum diag
    col_sums = jnp.sum(colsum[:, 0, :], axis=0)[:b]             # (B,)
    col_side = jnp.sum(jnp.log(col_sums))                       # sum_cols lse
    return (row_side + col_side) / (2.0 * b)


def _ref_loss(images, captions):
    # Pure-JAX reference of the PyTorch forward (for correctness check).
    img_n = images / jnp.maximum(jnp.linalg.norm(images, axis=-1, keepdims=True), EPS)
    cap_n = captions / jnp.maximum(jnp.linalg.norm(captions, axis=-1, keepdims=True), EPS)
    s = (img_n @ cap_n.T) / TEMPERATURE
    b = s.shape[0]
    diag = jnp.diag(s)
    loss_img = jax.scipy.special.logsumexp(s, axis=1) - diag
    loss_cap = jax.scipy.special.logsumexp(s, axis=0) - diag
    return (jnp.sum(loss_img) + jnp.sum(loss_cap)) / (2.0 * b)


if __name__ == "__main__":
    key = jax.random.PRNGKey(0)
    k_img, k_cap = jax.random.split(key)

    # Primary shapes implied by the module: (batch_size, embed_dim) pairs.
    B, D = 8, 32
    images = jax.random.normal(k_img, (B, D), dtype=jnp.float32)
    captions = jax.random.normal(k_cap, (B, D), dtype=jnp.float32)
    ref = _ref_loss(images, captions)

    loss_f32 = infonce_contrastive_loss(images, captions, matmul_dtype=jnp.float32)
    jax.block_until_ready(loss_f32)
    assert jnp.allclose(loss_f32, ref, rtol=1e-4, atol=1e-4), (float(loss_f32), float(ref))

    loss_bf16 = infonce_contrastive_loss(images, captions)   # bf16 MXU path
    jax.block_until_ready(loss_bf16)
    assert jnp.allclose(loss_bf16, ref, rtol=5e-2, atol=5e-2), (float(loss_bf16), float(ref))

    # Multi-tile path with decoupled tm/tn (tm=2*tn -> diagonal spans 2 column tiles).
    B2, D2 = 512, 128
    img2 = jax.random.normal(jax.random.PRNGKey(1), (B2, D2), dtype=jnp.float32)
    cap2 = jax.random.normal(jax.random.PRNGKey(2), (B2, D2), dtype=jnp.float32)
    ref2 = _ref_loss(img2, cap2)
    loss2 = infonce_contrastive_loss(img2, cap2, row_tile=256, col_tile=128)
    jax.block_until_ready(loss2)
    assert jnp.allclose(loss2, ref2, rtol=5e-2, atol=5e-2), (float(loss2), float(ref2))

    # Padded / masked path (batch not tile-aligned; padding spans >1 column tile).
    B3, D3 = 300, 64
    img3 = jax.random.normal(jax.random.PRNGKey(3), (B3, D3), dtype=jnp.float32)
    cap3 = jax.random.normal(jax.random.PRNGKey(4), (B3, D3), dtype=jnp.float32)
    ref3 = _ref_loss(img3, cap3)
    loss3 = infonce_contrastive_loss(img3, cap3, row_tile=256, col_tile=128,
                                     matmul_dtype=jnp.float32)
    jax.block_until_ready(loss3)
    assert jnp.allclose(loss3, ref3, rtol=1e-4, atol=1e-4), (float(loss3), float(ref3))

    print("KERNEL_OK")
</pallas_src>

<mosaic_0001>
module attributes {stable_mosaic.version = 11 : i64} {
  func.func @kernel(%arg0: i32, %arg1: i32, %arg2: memref<8x32xf32, #tpu.memory_space<vmem>>, %arg3: memref<8x32xf32, #tpu.memory_space<vmem>>, %arg4: memref<1x8x128xf32, #tpu.memory_space<vmem>>, %arg5: memref<1x8x8xf32, #tpu.memory_space<vmem>>, %arg6: memref<8x1xf32, #tpu.memory_space<vmem>>, %arg7: memref<1x1xf32, #tpu.memory_space<vmem>>) attributes {dimension_semantics = [#tpu.dimension_semantics<parallel>, #tpu.dimension_semantics<arbitrary>], iteration_bounds = array<i64: 1, 1>, scalar_prefetch = 0 : i64, scratch_operands = 2 : i64, tpu.core_type = #tpu.core_type<tc>, window_params = [{transform_indices = @transform_0, window_bounds = array<i64: 8, 32>}, {transform_indices = @transform_1, window_bounds = array<i64: 8, 32>}, {transform_indices = @transform_2, window_bounds = array<i64: 1, 8, 128>}, {transform_indices = @transform_3, window_bounds = array<i64: 1, 8, 8>}]} {
    %c0_i32 = arith.constant 0 : i32
    %0 = arith.cmpi eq, %arg1, %c0_i32 : i32
    %1 = arith.extui %0 : i1 to i32
    %c0_i32_0 = arith.constant 0 : i32
    %2 = arith.cmpi ne, %1, %c0_i32_0 : i32
    scf.if %2 {
      %cst_18 = arith.constant 0.000000e+00 : f32
      %29 = vector.broadcast %cst_18 : f32 to vector<8x1xf32>
      %c0_19 = arith.constant 0 : index
      %c0_20 = arith.constant 0 : index
      %30 = vector.load %arg6[%c0_19, %c0_20] : memref<8x1xf32, #tpu.memory_space<vmem>>, vector<8x1xf32>
      tpu.vector_store %arg6[%c0_19, %c0_20], %29 {strides = array<i32>} : memref<8x1xf32, #tpu.memory_space<vmem>>, vector<8x1xf32>,
      %cst_21 = arith.constant 0.000000e+00 : f32
      %31 = vector.broadcast %cst_21 : f32 to vector<1x1xf32>
      %c0_22 = arith.constant 0 : index
      %c0_23 = arith.constant 0 : index
      %32 = vector.load %arg7[%c0_22, %c0_23] : memref<1x1xf32, #tpu.memory_space<vmem>>, vector<1x1xf32>
      tpu.vector_store %arg7[%c0_22, %c0_23], %31 {strides = array<i32>} : memref<1x1xf32, #tpu.memory_space<vmem>>, vector<1x1xf32>,
      %cst_24 = arith.constant 0.000000e+00 : f32
      %33 = vector.broadcast %cst_24 : f32 to vector<1x8x128xf32>
      %c0_25 = arith.constant 0 : index
      %c0_26 = arith.constant 0 : index
      %c0_27 = arith.constant 0 : index
      %34 = vector.load %arg4[%c0_25, %c0_26, %c0_27] : memref<1x8x128xf32, #tpu.memory_space<vmem>>, vector<1x8x128xf32>
      tpu.vector_store %arg4[%c0_25, %c0_26, %c0_27], %33 {strides = array<i32>} : memref<1x8x128xf32, #tpu.memory_space<vmem>>, vector<1x8x128xf32>,
    } else {
    }
    %c0 = arith.constant 0 : index
    %c0_1 = arith.constant 0 : index
    %3 = vector.load %arg2[%c0, %c0_1] : memref<8x32xf32, #tpu.memory_space<vmem>>, vector<8x32xf32>
    %c0_2 = arith.constant 0 : index
    %c0_3 = arith.constant 0 : index
    %4 = vector.load %arg3[%c0_2, %c0_3] : memref<8x32xf32, #tpu.memory_space<vmem>>, vector<8x32xf32>
    %cst = arith.constant dense<0.000000e+00> : vector<8x8xf32>
    %5 = tpu.matmul %3, %4, %cst {dimension_numbers = #tpu.dot_dimension_numbers<[1], [1], [0], [0], [0, 0, 1, 0], [], []>} : vector<8x32xf32>, vector<8x32xf32>, vector<8x8xf32> -> vector<8x8xf32>
    %6 = math.exp %5 : vector<8x8xf32>
    %c0_4 = arith.constant 0 : index
    %c0_5 = arith.constant 0 : index
    %7 = vector.load %arg6[%c0_4, %c0_5] : memref<8x1xf32, #tpu.memory_space<vmem>>, vector<8x1xf32>
    %cst_6 = arith.constant dense<0.000000e+00> : vector<8xf32>
    %8 = vector.multi_reduction <add>, %6, %cst_6 [1] : vector<8x8xf32> to vector<8xf32>
    %9 = vector.shape_cast %8 : vector<8xf32> to vector<8x1xf32>
    %10 = arith.addf %7, %9 : vector<8x1xf32>
    %c0_7 = arith.constant 0 : index
    %c0_8 = arith.constant 0 : index
    %11 = vector.load %arg6[%c0_7, %c0_8] : memref<8x1xf32, #tpu.memory_space<vmem>>, vector<8x1xf32>
    tpu.vector_store %arg6[%c0_7, %c0_8], %10 {strides = array<i32>} : memref<8x1xf32, #tpu.memory_space<vmem>>, vector<8x1xf32>,
    %cst_9 = arith.constant dense<0.000000e+00> : vector<8xf32>
    %12 = vector.multi_reduction <add>, %6, %cst_9 [0] : vector<8x8xf32> to vector<8xf32>
    %13 = vector.shape_cast %12 : vector<8xf32> to vector<1x8xf32>
    %14 = vector.shape_cast %13 : vector<1x8xf32> to vector<1x1x8xf32>
    %15 = vector.shape_cast %14 : vector<1x1x8xf32> to vector<1x1x8xf32>
    %16 = vector.broadcast %15 : vector<1x1x8xf32> to vector<1x8x8xf32>
    %c0_10 = arith.constant 0 : index
    %c0_11 = arith.constant 0 : index
    %c0_12 = arith.constant 0 : index
    %17 = vector.load %arg5[%c0_10, %c0_11, %c0_12] : memref<1x8x8xf32, #tpu.memory_space<vmem>>, vector<1x8x8xf32>
    tpu.vector_store %arg5[%c0_10, %c0_11, %c0_12], %16 {strides = array<i32>} : memref<1x8x8xf32, #tpu.memory_space<vmem>>, vector<1x8x8xf32>,
    %c1_i32 = arith.constant 1 : i32
    %18 = arith.muli %arg0, %c1_i32 : i32
    %19 = arith.cmpi sge, %arg1, %18 : i32
    %c1_i32_13 = arith.constant 1 : i32
    %20 = arith.addi %arg0, %c1_i32_13 : i32
    %c1_i32_14 = arith.constant 1 : i32
    %21 = arith.muli %20, %c1_i32_14 : i32
    %22 = arith.cmpi slt, %arg1, %21 : i32
    %23 = arith.andi %19, %22 : i1
    %24 = arith.extui %23 : i1 to i32
    %c0_i32_15 = arith.constant 0 : i32
    %25 = arith.cmpi ne, %24, %c0_i32_15 : i32
    scf.if %25 {
      %c0_18 = arith.constant 0 : index
      %c0_19 = arith.constant 0 : index
      %29 = vector.load %arg2[%c0_18, %c0_19] : memref<8x32xf32, #tpu.memory_space<vmem>>, vector<8x32xf32>
      %c0_20 = arith.constant 0 : index
      %c0_21 = arith.constant 0 : index
      %30 = vector.load %arg3[%c0_20, %c0_21] : memref<8x32xf32, #tpu.memory_space<vmem>>, vector<8x32xf32>
      %31 = arith.mulf %29, %30 : vector<8x32xf32>
      %cst_22 = arith.constant dense<0.000000e+00> : vector<8xf32>
      %32 = vector.multi_reduction <add>, %31, %cst_22 [1] : vector<8x32xf32> to vector<8xf32>
      %33 = vector.shape_cast %32 : vector<8xf32> to vector<8x1xf32>
      %c0_23 = arith.constant 0 : index
      %c0_24 = arith.constant 0 : index
      %34 = vector.load %arg7[%c0_23, %c0_24] : memref<1x1xf32, #tpu.memory_space<vmem>>, vector<1x1xf32>
      %35 = vector.shape_cast %33 : vector<8x1xf32> to vector<1x8x1xf32>
      %cst_25 = arith.constant dense<0.000000e+00> : vector<1xf32>
      %36 = vector.multi_reduction <add>, %35, %cst_25 [1, 2] : vector<1x8x1xf32> to vector<1xf32>
      %37 = vector.shape_cast %36 : vector<1xf32> to vector<1x1x1xf32>
      %38 = vector.extract %37[0, 0, 0] : f32 from vector<1x1x1xf32>
      %cst_26 = arith.constant 2.000000e+00 : f32
      %39 = arith.mulf %cst_26, %38 : f32
      %40 = vector.broadcast %39 : f32 to vector<1x1xf32>
      %41 = arith.subf %34, %40 : vector<1x1xf32>
      %c0_27 = arith.constant 0 : index
      %c0_28 = arith.constant 0 : index
      %42 = vector.load %arg7[%c0_27, %c0_28] : memref<1x1xf32, #tpu.memory_space<vmem>>, vector<1x1xf32>
      tpu.vector_store %arg7[%c0_27, %c0_28], %41 {strides = array<i32>} : memref<1x1xf32, #tpu.memory_space<vmem>>, vector<1x1xf32>,
    } else {
    }
    %c0_i32_16 = arith.constant 0 : i32
    %26 = arith.cmpi eq, %arg1, %c0_i32_16 : i32
    %27 = arith.extui %26 : i1 to i32
    %c0_i32_17 = arith.constant 0 : i32
    %28 = arith.cmpi ne, %27, %c0_i32_17 : i32
    scf.if %28 {
      %c0_18 = arith.constant 0 : index
      %c0_19 = arith.constant 0 : index
      %29 = vector.load %arg6[%c0_18, %c0_19] : memref<8x1xf32, #tpu.memory_space<vmem>>, vector<8x1xf32>
      %30 = math.log %29 : vector<8x1xf32>
      %c0_20 = arith.constant 0 : index
      %c0_21 = arith.constant 0 : index
      %31 = vector.load %arg7[%c0_20, %c0_21] : memref<1x1xf32, #tpu.memory_space<vmem>>, vector<1x1xf32>
      %32 = vector.shape_cast %30 : vector<8x1xf32> to vector<1x8x1xf32>
      %cst_22 = arith.constant dense<0.000000e+00> : vector<1xf32>
      %33 = vector.multi_reduction <add>, %32, %cst_22 [1, 2] : vector<1x8x1xf32> to vector<1xf32>
      %34 = vector.shape_cast %33 : vector<1xf32> to vector<1x1x1xf32>
      %35 = vector.extract %34[0, 0, 0] : f32 from vector<1x1x1xf32>
      %36 = vector.broadcast %35 : f32 to vector<1x1xf32>
      %37 = arith.addf %31, %36 : vector<1x1xf32>
      %38 = vector.shape_cast %37 : vector<1x1xf32> to vector<1x1x1xf32>
      %39 = vector.shape_cast %38 : vector<1x1x1xf32> to vector<1x1x1xf32>
      %40 = vector.broadcast %39 : vector<1x1x1xf32> to vector<1x8x128xf32>
      %c0_23 = arith.constant 0 : index
      %c0_24 = arith.constant 0 : index
      %c0_25 = arith.constant 0 : index
      %41 = vector.load %arg4[%c0_23, %c0_24, %c0_25] : memref<1x8x128xf32, #tpu.memory_space<vmem>>, vector<1x8x128xf32>
      tpu.vector_store %arg4[%c0_23, %c0_24, %c0_25], %40 {strides = array<i32>} : memref<1x8x128xf32, #tpu.memory_space<vmem>>, vector<1x8x128xf32>,
    } else {
    }
    return
  }
  func.func @transform_0(%arg0: i32, %arg1: i32) -> (i32, i32) {
    %c0_i32 = arith.constant 0 : i32
    %c0_i32_0 = arith.constant 0 : i32
    return %arg0, %c0_i32 : i32, i32
  }
  func.func @transform_1(%arg0: i32, %arg1: i32) -> (i32, i32) {
    %c0_i32 = arith.constant 0 : i32
    %c0_i32_0 = arith.constant 0 : i32
    return %arg1, %c0_i32 : i32, i32
  }
  func.func @transform_2(%arg0: i32, %arg1: i32) -> (i32, i32, i32) {
    %c0_i32 = arith.constant 0 : i32
    %c0_i32_0 = arith.constant 0 : i32
    %c0_i32_1 = arith.constant 0 : i32
    return %arg0, %c0_i32, %c0_i32_0 : i32, i32, i32
  }
  func.func @transform_3(%arg0: i32, %arg1: i32) -> (i32, i32, i32) {
    %c0_i32 = arith.constant 0 : i32
    %c0_i32_0 = arith.constant 0 : i32
    return %arg0, %c0_i32, %arg1 : i32, i32, i32
  }
}

</mosaic_0001>

<bundles_post_ra>
// kernel: tpu_custom_call.1
= control target key start
LH: loop header
LB: loop body
LE: loop exit
PB: predicated region body
PF: predicated region fallthrough
CT: control target
= control target key end

     0   :  { %9 = vsyncpa [#allocation5], 0  ;;  %s437_s0 = inlined_call_operand.hbm [shape: f32[8,32], index: 0, kind: input, shape index: {}]   ;;  %s438_s1 = inlined_call_operand.hbm [shape: f32[8,32], index: 1, kind: input, shape index: {}]   ;;  %s439_s2 = inlined_call_operand.hbm [shape: f32[1,8,128], index: 2, kind: output, shape index: {0}]   ;;  %s440_s3 = inlined_call_operand.hbm [shape: f32[1,8,8], index: 3, kind: output, shape index: {1}]  }
   0x1   :  { %10 = vsyncpa [#allocation8], 0 }
   0x2   :  { %11 = vsyncpa [#allocation6], 0 }
   0x3   :  { %12 = vsyncpa [#allocation11], 0  ;;  %s353_s12 = smov [#allocation4]   ;;  %s354_s14 = smov [#allocation7]  }
   0x4   :  { %s19_s13 = sshll.u32 %s353_s12, 4  ;;  %s29_s15 = sshll.u32 %s354_s14, 4  ;;  %s20_s13 = int_to_ptr.vmem [resolvable:$true] %s19_s13  ;;  %s30_s15 = int_to_ptr.vmem [resolvable:$true] %s29_s15 }
   0x5   :  { %s257_s18 = scalar_lea.hbm %s437_s0, 128 }
   0x6   :  { %p258_p0 = scmp.ne.s32.totalorder %s437_s0, %s257_s18  ;;  %p261_p1 = scmp.lt.u32.totalorder %s257_s18, %s437_s0 }
   0x8   :  { %p263_p2 = pnand %p261_p1, %p258_p0 }
   0xa   :  { %266 = shalt.err (!%p263_p2)
}
   0xb   :  { %s267_s23 = scalar_lea.vmem %s20_s13, 128  ;;  %p272_p4 = scmp.lt.s32.totalorder %s20_s13, %s20_s13 }
   0xc   :  { %p268_p3 = scmp.ne.s32.totalorder %s20_s13, %s267_s23  ;;  %p273_p5 = scmp.lt.s32.totalorder %s267_s23, %s267_s23 }
   0xe   :  { %p274_p6 = por %p273_p5, %p272_p4 }
  0x10   :  { %p275_p7 = pnand %p274_p6, %p268_p3 }
  0x12   :  { %278 = shalt.err (!%p275_p7)
}
  0x13   :  { %22 = dma.hbm_to_vmem [thread:$0]  %s437_s0, 128, %s20_s13, [#allocation5]  }
  0x14   :  { %s279_s28 = scalar_lea.hbm %s438_s1, 128 }
  0x15   :  { %p280_p8 = scmp.ne.s32.totalorder %s438_s1, %s279_s28  ;;  %p283_p9 = scmp.lt.u32.totalorder %s279_s28, %s438_s1 }
  0x17   :  { %p285_p10 = pnand %p283_p9, %p280_p8 }
  0x19   :  { %288 = shalt.err (!%p285_p10)
}
  0x1a   :  { %s289_s6 = scalar_lea.vmem %s30_s15, 128  ;;  %p294_p12 = scmp.lt.s32.totalorder %s30_s15, %s30_s15 }
  0x1b   :  { %p290_p11 = scmp.ne.s32.totalorder %s30_s15, %s289_s6  ;;  %p295_p13 = scmp.lt.s32.totalorder %s289_s6, %s289_s6 }
  0x1d   :  { %p296_p0 = por %p295_p13, %p294_p12 }
  0x1f   :  { %p297_p1 = pnand %p296_p0, %p290_p11 }
  0x21   :  { %300 = shalt.err (!%p297_p1)
}
  0x22   :  { %32 = dma.hbm_to_vmem [thread:$0]  %s438_s1, 128, %s30_s15, [#allocation8]  }
  0x23   :  { %345 = dma.done.wait [#allocation5], 128  }
  0x24   :  { %346 = vsyncadd [#allocation5], 4294967168 }
  0x25   :  { %347 = dma.done.wait [#allocation8], 128  }
  0x26   :  { %348 = vsyncadd [#allocation8], 4294967168  ;;  %vm45_vm0 = vcmask 0   ;;  %v355_v0 = vmov 0.0   ;;  %vm356_vm1 = vmmov 0   ;;  %vm50_vm2 = vcmask 261120  }
  0x27   :  { %46 = vst.msk [vmem:[#allocation3] sm:$0x1] %vm45_vm0, %v355_v0  ;;  %236 = vmatprep.subr.mxu0 %v355_v0  ;;  %238 = vmatprep.mubr.msk.f32.mxu0 %vm356_vm1, %v355_v0  ;;  %v49_v1 = vld [vmem:[#allocation7] sm:$0xff]  ;;  %v48_v2 = vld [vmem:[#allocation4] sm:$0xff]  ;;  %vm43_vm3 = vcmask 7168   ;;  %vm130_vm4 = vcmask 64512   ;;  %v193_v43 = vlaneseq }
  0x28   :  { %237 = vmatpush3.xpose.msk.msra.mxu0 %vm50_vm2, %v49_v1  ;;  %44 = vst.msk [vmem:[#allocation2] sm:$0xff] %vm43_vm3, %v355_v0  ;;  %v153_v6 = vmul.f32 %v49_v1, %v48_v2  ;;  %v357_v25 = vmov 0   ;;  %s358_s10 = smov [#allocation10]  }
  0x29   :  { %252 = vset.pattern.permute.xlu0 %v357_v25  ;;  %v194_v44 = vshrl.u32 %v193_v43, 7  ;;  %s218_s11 = sshll.u32 %s358_s10, 4  ;;  %s219_s11 = int_to_ptr.vmem [resolvable:$true] %s218_s11 }
  0x2a   :  { %v154_v10 = vsel %vm50_vm2, %v153_v6, 0.0  ;;  %s301_s12 = scalar_lea.vmem %s219_s11, 128  ;;  %p306_p3 = scmp.lt.s32.totalorder %s219_s11, %s219_s11 }
  0x2b   :  { %239 = vmatmul.mubr.msk.f32.vlgmr.msra.gmra.mrb[0].mxu0 %vm50_vm2, %v48_v2  ;;  %v195_v45 = vsub.s32 0, %v194_v44  ;;  %p302_p2 = scmp.ne.s32.totalorder %s219_s11, %s301_s12  ;;  %p307_p4 = scmp.lt.s32.totalorder %s301_s12, %s301_s12 }
  0x2d   :  { %p308_p5 = por %p307_p4, %p306_p3 }
  0x2e   :  { %v157_v40 = vld [vmem:[#allocation3] sm:$0x1] }
  0x2f   :  { %v129_v16 = vld [vmem:[#allocation2] sm:$0xff]  ;;  %p309_p6 = pnand %p308_p5, %p302_p2 }
  0xfe   :  { %v123_v3 = vpop.f32.mrb[0].mxu0 }
  0xff   :  { %v127_v4 = vmul.f32 1.442695, %v123_v3  ;;  %v240_v5 = vpop.f32.mrb[1].mxu0 }
 0x101   :  { %253 = vpow2.f32 %v127_v4 }
 0x10b   :  { %v254_v7 = vpop.eup %253 }
 0x10c   :  { %v131_v8 = vsel %vm130_vm4, %v254_v7, 0.0 }
 0x10d   :  { %132 = vadd.xlane.f32.xlu0 %v131_v8  ;;  %v137_v9 = vrot.slane %v131_v8, 4 }
 0x10f   :  { %v138_v11 = vadd.f32 %v137_v9, %v131_v8 }
 0x111   :  { %v139_v12 = vrot.slane %v138_v11, 2  ;;  %155 = vadd.xlane.f32.xlu0 %v154_v10 }
 0x113   :  { %v140_v13 = vadd.f32 %v139_v12, %v138_v11 }
 0x115   :  { %v141_v14 = vrot.slane %v140_v13, 1 }
 0x117   :  { %v142_v15 = vadd.f32 %v141_v14, %v140_v13 }
 0x119   :  { %143 = vst.msk [vmem:[#allocation10] sm:$0xff] %vm130_vm4, %v142_v15 }
 0x19a   :  { %v133_v17 = vpop.xlane.xlu0 %132 }
 0x19b   :  { %v134_v18 = vadd.f32 %v133_v17, %v129_v16 }
 0x19d   :  { %136 = vst.msk [vmem:[#allocation2] sm:$0xff] %vm43_vm3, %v134_v18 }
 0x19e   :  { %v156_v19 = vpop.xlane.xlu0 %155 }
 0x19f   :  { %v158_v20 = vsel %vm43_vm3, %v156_v19, 0.0 }
 0x1a0   :  { %159 = vadd.xlane.f32.xlu1 %v158_v20 }
 0x1a4   :  { %v176_v21 = vld [vmem:[#allocation2] sm:$0xff] }
 0x1a5   :  { %255 = vlog2.f32 %v176_v21 }
 0x1af   :  { %v256_v22 = vpop.eup %255 }
 0x1b0   :  { %v178_v23 = vmul.f32 0.6931472, %v256_v22 }
 0x1b2   :  { %v180_v24 = vsel %vm43_vm3, %v178_v23, 0.0 }
 0x1b3   :  { %181 = vadd.xlane.f32.xlu1 %v180_v24 }
 0x22d   :  { %v160_v26 = vpop.xlane.xlu1 %159 }
 0x22e   :  { %v161_v27 = vrot.slane %v160_v26, 4 }
 0x230   :  { %v162_v28 = vadd.f32 %v161_v27, %v160_v26 }
 0x232   :  { %v163_v29 = vrot.slane %v162_v28, 2 }
 0x234   :  { %v164_v30 = vadd.f32 %v163_v29, %v162_v28 }
 0x236   :  { %v165_v31 = vrot.slane %v164_v30, 1 }
 0x238   :  { %v166_v32 = vadd.f32 %v165_v31, %v164_v30 }
 0x23a   :  { %241 = vpush %v166_v32 }
 0x240   :  { %v182_v33 = vpop.xlane.xlu1 %181 }
 0x241   :  { %v183_v34 = vrot.slane %v182_v33, 4 }
 0x243   :  { %v184_v35 = vadd.f32 %v183_v34, %v182_v33 }
 0x245   :  { %v185_v36 = vrot.slane %v184_v35, 2 }
 0x247   :  { %v186_v37 = vadd.f32 %v185_v36, %v184_v35 }
 0x249   :  { %v187_v38 = vrot.slane %v186_v37, 1 }
 0x24b   :  { %v188_v39 = vadd.f32 %v187_v38, %v186_v37 }
 0x24d   :  { %243 = vpush %v188_v39 }
 0x26b   :  { %s242_s1 = spop %241 }
 0x26c   :  { %s168_s8 = smul.f32 2.0, %s242_s1 }
 0x26e   :  { %v169_v41 = vstv %s168_s8 }
 0x26f   :  { %v170_v42 = vsub.f32 %v157_v40, %v169_v41 }
 0x271   :  { %172 = vst.msk [vmem:[#allocation3] sm:$0x1] %vm45_vm0, %v170_v42 }
 0x278   :  { %v179_v46 = vld [vmem:[#allocation3] sm:$0x1] }
 0x27e   :  { %s244_s9 = spop %243 }
 0x27f   :  { %v190_v47 = vstv %s244_s9 }
 0x280   :  { %v191_v48 = vadd.f32 %v190_v47, %v179_v46 }
 0x282   :  { %v196_v49 = vrot.slane %v191_v48, %v195_v45 }
 0x284   :  { %198 = vperm.xlu0 %252, %v196_v49  }
 0x285   :  { %312 = shalt.err (!%p309_p6)
}
 0x286   :  { %s313_s15 = scalar_lea.hbm %s440_s3, 128 }
 0x287   :  { %p314_p7 = scmp.ne.s32.totalorder %s440_s3, %s313_s15  ;;  %p317_p8 = scmp.lt.u32.totalorder %s313_s15, %s440_s3 }
 0x289   :  { %p319_p9 = pnand %p317_p8, %p314_p7 }
 0x28b   :  { %322 = shalt.err (!%p319_p9)
}
 0x28c   :  { %221 = dma.vmem_to_hbm [thread:$0]  %s219_s11, 128, %s440_s3, [#allocation11]  }
 0x28d   :  { %s359_s22 = smov [#allocation9]  }
 0x28e   :  { %s208_s23 = sshll.u32 %s359_s22, 4  ;;  %s209_s23 = int_to_ptr.vmem [resolvable:$true] %s208_s23 }
 0x28f   :  { %s323_s24 = scalar_lea.vmem %s209_s23, 128  ;;  %p328_p11 = scmp.lt.s32.totalorder %s209_s23, %s209_s23 }
 0x290   :  { %p324_p10 = scmp.ne.s32.totalorder %s209_s23, %s323_s24  ;;  %p329_p12 = scmp.lt.s32.totalorder %s323_s24, %s323_s24 }
 0x292   :  { %p330_p13 = por %p329_p12, %p328_p11 }
 0x294   :  { %p331_p0 = pnand %p330_p13, %p324_p10 }
 0x303   :  { %v199_v50 = vpop.permute.xlu0 %198 }
 0x304   :  { %201 = vst [vmem:[#allocation9] sm:$0xff] %v199_v50 }
 0x305   :  { %334 = shalt.err (!%p331_p0)
}
 0x306   :  { %s335_s27 = scalar_lea.hbm %s439_s2, 128 }
 0x307   :  { %p336_p1 = scmp.ne.s32.totalorder %s439_s2, %s335_s27  ;;  %p339_p2 = scmp.lt.u32.totalorder %s335_s27, %s439_s2 }
 0x309   :  { %p341_p3 = pnand %p339_p2, %p336_p1 }
 0x30b   :  { %344 = shalt.err (!%p341_p3)
}
 0x30c   :  { %211 = dma.vmem_to_hbm [thread:$0]  %s209_s23, 128, %s439_s2, [#allocation6]  }
 0x30d   :  { %349 = dma.done.wait [#allocation6], 128  }
 0x30e   :  { %350 = vsyncadd [#allocation6], 4294967168 }
 0x30f   :  { %351 = dma.done.wait [#allocation11], 128  }
 0x310   :  { %352 = vsyncadd [#allocation11], 4294967168 }
 0x311   :  { %228 = vsyncpa [#allocation5], 1 }
 0x312   :  { %229 = vsyncpa [#allocation8], 1 }
 0x313   :  { %230 = vsyncpa [#allocation6], 1 }
 0x314   :  { %231 = vsyncpa [#allocation11], 1 }

</bundles_post_ra>
